<compile_context>
chip_gen: v6e
topology: v6e:2x2x1
jax: 0.10.0
libtpu: 0.0.40
codegen_flags: <defaults>
</compile_context>

<pallas_src>
import functools
import math

import jax
import jax.numpy as jnp
from jax import lax
from jax.experimental import pallas as pl
from jax.experimental.pallas import tpu as pltpu

_MiB = 1024 * 1024


def _flash_attn_kernel(q_ref, k_ref, v_ref, o_ref, m_sc, l_sc, acc_sc, qs_sc,
                       *, scale, use_bf16_exp, need_mask, t_valid):
    """One (batch*head, q-tile, kv-tile) grid step.

    q_ref: (1, C, tq), k_ref/v_ref: (1, C, tkv), o_ref: (1, C, tq).
    Scratch (persist over the kv axis): m_sc/l_sc (1, tq) f32,
    acc_sc (C, tq) f32, qs_sc (C, tq) input-dtype (pre-scaled Q).
    """
    kvi = pl.program_id(2)
    tkv = k_ref.shape[2]

    @pl.when(kvi == 0)
    def _init():
        m_sc[...] = jnp.full_like(m_sc, -jnp.inf)
        l_sc[...] = jnp.zeros_like(l_sc)
        acc_sc[...] = jnp.zeros_like(acc_sc)
        # scale == (C**-0.25)**2 folded into Q once per q tile (Q is resident
        # across the kv axis, so don't re-multiply every kv step).
        qs_sc[...] = (q_ref[0] * scale).astype(qs_sc.dtype)

    q = qs_sc[...]                     # (C, tq)  pre-scaled, input dtype
    k = k_ref[0]                       # (C, tkv)
    v = v_ref[0]                       # (C, tkv)

    # st[s, t] = sum_c k[c, s] * q[c, t]  (contraction on channels; no XLU
    # transpose of the (tkv, tq) tile).
    st = lax.dot_general(k, q, (((0,), (0,)), ((), ())),
                         preferred_element_type=jnp.float32)   # (tkv, tq) f32

    if need_mask:
        # Tail kv rows beyond the true sequence length are padding -> -inf.
        row = lax.broadcasted_iota(jnp.int32, st.shape, 0) + kvi * tkv
        st = jnp.where(row < t_valid, st, -jnp.inf)

    m_prev = m_sc[...]                                           # (1, tq)
    m_new = jnp.maximum(m_prev, jnp.max(st, axis=0, keepdims=True))
    alpha = jnp.exp(m_prev - m_new)                              # (1, tq) f32

    if use_bf16_exp:
        # EUP-bound regime on v6e/v7x for small head dims: bf16 exp runs ~2x
        # the f32 rate and feeds the PV matmul with no extra cast pass.
        p = jnp.exp((st - m_new).astype(jnp.bfloat16))           # (tkv, tq)
        p_sum = jnp.sum(p.astype(jnp.float32), axis=0, keepdims=True)
        pv = jnp.dot(v, p, preferred_element_type=jnp.float32)
    else:
        p = jnp.exp(st - m_new)                                  # f32
        p_sum = jnp.sum(p, axis=0, keepdims=True)
        pv = jnp.dot(v, p.astype(v.dtype), preferred_element_type=jnp.float32)

    l_sc[...] = alpha * l_sc[...] + p_sum
    acc_sc[...] = alpha * acc_sc[...] + pv
    m_sc[...] = m_new

    @pl.when(kvi == pl.num_programs(2) - 1)
    def _finalize():
        l = l_sc[...]
        inv_l = pl.reciprocal(l, approx=True)      # EUP slot (otherwise idle)
        inv_l = inv_l * (2.0 - l * inv_l)          # one Newton step -> ~exact
        o_ref[0] = (acc_sc[...] * inv_l).astype(o_ref.dtype)


def _tpu_info():
    """(is_v5, physical VMEM bytes) with conservative fallbacks."""
    is_v5 = False
    vmem_phys = 64 * _MiB                       # conservative (v7x-sized)
    try:
        kind = jax.devices()[0].device_kind.lower()
        is_v5 = "v5" in kind
    except Exception:
        pass
    try:
        info = pltpu.get_tpu_info()
        cap = int(getattr(info, "vmem_capacity_bytes", 0) or 0)
        if cap > 0:
            vmem_phys = cap
    except Exception:
        pass
    return is_v5, vmem_phys


def _vmem_budget(tq, tkv, ch, itemsize):
    """Bytes in flight for one grid step (double-buffered blocks + scratch)."""
    st_p = 2 * tkv * tq * 4                     # f32 score + prob temporaries
    q_in = 2 * ch * tq * itemsize               # double-buffered Q block
    kv_in = 2 * 2 * ch * tkv * itemsize         # double-buffered K and V blocks
    o_out = 2 * ch * tq * itemsize              # double-buffered O block
    acc = ch * tq * 4                           # f32 accumulator scratch
    qs = ch * tq * itemsize                     # scaled-Q scratch
    stats = 2 * tq * 4                          # m, l
    return st_p + q_in + kv_in + o_out + acc + qs + stats


def _pick_tile(T, cap, granule):
    """Largest tile <= cap dividing T, preferring `granule` multiples."""
    if T <= cap:
        return T
    for g in (granule, 128):
        t = (cap // g) * g
        while t >= g:
            if T % t == 0:
                return t
            t -= g
    return T


def _select_tiles(T, ch, itemsize, vmem_target):
    granule = 256 if T % 256 == 0 else 128      # 256-wide MXU on v6e/v7x
    tkv = _pick_tile(T, 512, granule)           # temporaries scale with tkv*tq
    tq = _pick_tile(T, 2048, granule)           # K/V HBM re-reads scale as T/tq
    while tq > granule and _vmem_budget(tq, tkv, ch, itemsize) > vmem_target:
        tq = _pick_tile(T, tq - granule, granule)
    return tq, tkv


def qkv_attention_legacy(qkv, n_heads, *, q_tile=None, kv_tile=None):
    """qkv: [N, H*3*C, T]  ->  [N, H*C, T]  (QKVAttentionLegacy.forward)."""
    bs, width, length = qkv.shape
    assert width % (3 * n_heads) == 0
    ch = width // (3 * n_heads)
    b = bs * n_heads
    dtype = qkv.dtype
    itemsize = jnp.dtype(dtype).itemsize

    qkv_r = qkv.reshape(b, 3 * ch, length)      # free reshape (row-major merge)
    scale = 1.0 / math.sqrt(ch)                 # == (ch**-0.25)**2, on q only

    is_v5, vmem_phys = _tpu_info()
    use_bf16_exp = (dtype == jnp.bfloat16) and not is_v5
    vmem_target = max(16 * _MiB, vmem_phys // 2 - 8 * _MiB)

    # --- sequence padding / tiling --------------------------------------
    if length % 128 != 0 and length <= 512:
        T, pad = length, 0                      # small: one full-T tile is fine
    else:
        pad = (-length) % 128
        T = length + pad
    need_mask = pad > 0
    x = qkv_r if pad == 0 else jnp.pad(qkv_r, ((0, 0), (0, 0), (0, pad)))

    if q_tile is not None or kv_tile is not None:
        tq = q_tile if q_tile is not None else T
        tkv = kv_tile if kv_tile is not None else T
    else:
        tq, tkv = _select_tiles(T, ch, itemsize, vmem_target)
    assert T % tq == 0 and T % tkv == 0
    grid = (b, T // tq, T // tkv)

    # --- input specs ------------------------------------------------------
    # Packed-sublane granule along the (3*C) axis: 8 (f32), 16 (bf16), 32 (i8).
    pack = max(8, 32 // itemsize)
    if ch % pack == 0:
        # Single HBM tensor; three BlockSpec views select block 0/1/2 along the
        # (3*C) axis -> no q/k/v copies through HBM.
        inputs = (x, x, x)
        in_specs = [
            pl.BlockSpec((1, ch, tq),  lambda bh, qi, ki: (bh, 0, qi)),   # Q
            pl.BlockSpec((1, ch, tkv), lambda bh, qi, ki: (bh, 1, ki)),   # K
            pl.BlockSpec((1, ch, tkv), lambda bh, qi, ki: (bh, 2, ki)),   # V
        ]
    else:
        # Channel blocks can't land on packed-sublane boundaries: fall back to
        # wrapper-side slicing (full-channel blocks, no divisibility needed).
        q = x[:, 0 * ch:1 * ch, :]
        k = x[:, 1 * ch:2 * ch, :]
        v = x[:, 2 * ch:3 * ch, :]
        inputs = (q, k, v)
        in_specs = [
            pl.BlockSpec((1, ch, tq),  lambda bh, qi, ki: (bh, 0, qi)),
            pl.BlockSpec((1, ch, tkv), lambda bh, qi, ki: (bh, 0, ki)),
            pl.BlockSpec((1, ch, tkv), lambda bh, qi, ki: (bh, 0, ki)),
        ]

    out_spec = pl.BlockSpec((1, ch, tq), lambda bh, qi, ki: (bh, 0, qi))

    # --- VMEM limit & cost estimate --------------------------------------
    budget = _vmem_budget(tq, tkv, ch, itemsize)
    vmem_limit = int(min(max(32 * _MiB, budget + 16 * _MiB), 96 * _MiB))

    n_q_tiles = T // tq
    cost = pl.CostEstimate(
        flops=int(4 * b * ch * T * T),                     # QK^T + PV matmuls
        transcendentals=int(b * T * T),                    # exp
        bytes_accessed=int(b * ch * T * itemsize * (2 + 2 * n_q_tiles)),
    )

    kernel = functools.partial(
        _flash_attn_kernel, scale=scale, use_bf16_exp=use_bf16_exp,
        need_mask=need_mask, t_valid=length)

    out = pl.pallas_call(
        kernel,
        out_shape=jax.ShapeDtypeStruct((b, ch, T), dtype),
        grid_spec=pltpu.PrefetchScalarGridSpec(
            num_scalar_prefetch=0,
            grid=grid,
            in_specs=in_specs,
            out_specs=out_spec,
            scratch_shapes=[
                pltpu.VMEM((1, tq), jnp.float32),     # running max  m
                pltpu.VMEM((1, tq), jnp.float32),     # running sum  l
                pltpu.VMEM((ch, tq), jnp.float32),    # output accumulator
                pltpu.VMEM((ch, tq), dtype),          # pre-scaled Q cache
            ],
        ),
        compiler_params=pltpu.CompilerParams(
            dimension_semantics=("parallel", "parallel", "arbitrary"),
            vmem_limit_bytes=vmem_limit),
        cost_estimate=cost,
    )(*inputs)

    if pad:
        out = out[:, :, :length]
    return out.reshape(bs, n_heads * ch, length)


def _reference(qkv, n_heads):
    bs, width, length = qkv.shape
    ch = width // (3 * n_heads)
    qkv_r = qkv.reshape(bs * n_heads, ch * 3, length)
    q, k, v = qkv_r[:, :ch], qkv_r[:, ch:2 * ch], qkv_r[:, 2 * ch:]
    scale = 1.0 / math.sqrt(math.sqrt(ch))
    w = jnp.einsum('bct,bcs->bts', q * scale, k * scale)
    w = jax.nn.softmax(w.astype(jnp.float32), axis=-1).astype(w.dtype)
    a = jnp.einsum('bts,bcs->bct', w, v)
    return a.reshape(bs, -1, length)


if __name__ == "__main__":
    key = jax.random.PRNGKey(0)
    k1, k2, k3, k4 = jax.random.split(key, 4)

    # Test 1: tiny shape, single tile (module layout: [N, H*3*C, T]).
    n_heads = 2
    N, ch, T = 2, 8, 16
    qkv = jax.random.normal(k1, (N, n_heads * 3 * ch, T), dtype=jnp.float32)
    out = jax.block_until_ready(qkv_attention_legacy(qkv, n_heads))
    ref = _reference(qkv, n_heads)
    assert out.shape == (N, n_heads * ch, T)
    assert jnp.allclose(out, ref, atol=1e-4, rtol=1e-4), "mismatch (test 1)"

    # Test 2: multi-tile flash path (2 q tiles x 2 kv tiles), explicit tiles.
    n_heads2, N2, ch2, T2 = 2, 1, 16, 256
    qkv2 = jax.random.normal(k2, (N2, n_heads2 * 3 * ch2, T2), dtype=jnp.float32)
    out2 = jax.block_until_ready(
        qkv_attention_legacy(qkv2, n_heads2, q_tile=128, kv_tile=128))
    ref2 = _reference(qkv2, n_heads2)
    assert jnp.allclose(out2, ref2, atol=1e-4, rtol=1e-4), "mismatch (test 2)"

    # Test 3: non-128-aligned long sequence -> padded + masked kv tail.
    n_heads3, N3, ch3, T3 = 1, 1, 8, 576
    qkv3 = jax.random.normal(k3, (N3, n_heads3 * 3 * ch3, T3), dtype=jnp.float32)
    out3 = jax.block_until_ready(qkv_attention_legacy(qkv3, n_heads3))
    ref3 = _reference(qkv3, n_heads3)
    assert out3.shape == (N3, n_heads3 * ch3, T3)
    assert jnp.allclose(out3, ref3, atol=1e-4, rtol=1e-4), "mismatch (test 3)"

    # Test 4: bf16 inputs (bf16-exp path on v6e/v7x, f32-exp path on v5e).
    n_heads4, N4, ch4, T4 = 2, 1, 64, 256
    qkv4 = jax.random.normal(k4, (N4, n_heads4 * 3 * ch4, T4),
                             dtype=jnp.float32).astype(jnp.bfloat16)
    out4 = jax.block_until_ready(qkv_attention_legacy(qkv4, n_heads4))
    ref4 = _reference(qkv4.astype(jnp.float32), n_heads4)
    assert jnp.allclose(out4.astype(jnp.float32), ref4, atol=2e-2, rtol=2e-2), \
        "mismatch (test 4)"

    print("KERNEL_OK")
</pallas_src>

<mosaic_0001>
module attributes {stable_mosaic.version = 11 : i64} {
  func.func @_flash_attn_kernel(%arg0: i32, %arg1: i32, %arg2: i32, %arg3: memref<1x8x16xf32, #tpu.memory_space<vmem>>, %arg4: memref<1x8x16xf32, #tpu.memory_space<vmem>>, %arg5: memref<1x8x16xf32, #tpu.memory_space<vmem>>, %arg6: memref<1x8x16xf32, #tpu.memory_space<vmem>>, %arg7: memref<1x16xf32, #tpu.memory_space<vmem>>, %arg8: memref<1x16xf32, #tpu.memory_space<vmem>>, %arg9: memref<8x16xf32, #tpu.memory_space<vmem>>, %arg10: memref<8x16xf32, #tpu.memory_space<vmem>>) attributes {dimension_semantics = [#tpu.dimension_semantics<parallel>, #tpu.dimension_semantics<parallel>, #tpu.dimension_semantics<arbitrary>], iteration_bounds = array<i64: 4, 1, 1>, scalar_prefetch = 0 : i64, scratch_operands = 4 : i64, tpu.core_type = #tpu.core_type<tc>, window_params = [{transform_indices = @transform_0, window_bounds = array<i64: 1, 8, 16>}, {transform_indices = @transform_1, window_bounds = array<i64: 1, 8, 16>}, {transform_indices = @transform_2, window_bounds = array<i64: 1, 8, 16>}, {transform_indices = @transform_3, window_bounds = array<i64: 1, 8, 16>}]} {
    %c0_i32 = arith.constant 0 : i32
    %0 = arith.cmpi eq, %arg2, %c0_i32 : i32
    %1 = arith.extui %0 : i1 to i32
    %c0_i32_0 = arith.constant 0 : i32
    %2 = arith.cmpi ne, %1, %c0_i32_0 : i32
    scf.if %2 {
      %cst_25 = arith.constant 0xFF800000 : f32
      %34 = vector.broadcast %cst_25 : f32 to vector<1x16xf32>
      %c0_26 = arith.constant 0 : index
      %c0_27 = arith.constant 0 : index
      %35 = vector.load %arg7[%c0_26, %c0_27] : memref<1x16xf32, #tpu.memory_space<vmem>>, vector<1x16xf32>
      tpu.vector_store %arg7[%c0_26, %c0_27], %34 {strides = array<i32>} : memref<1x16xf32, #tpu.memory_space<vmem>>, vector<1x16xf32>,
      %cst_28 = arith.constant 0.000000e+00 : f32
      %36 = vector.broadcast %cst_28 : f32 to vector<1x16xf32>
      %c0_29 = arith.constant 0 : index
      %c0_30 = arith.constant 0 : index
      %37 = vector.load %arg8[%c0_29, %c0_30] : memref<1x16xf32, #tpu.memory_space<vmem>>, vector<1x16xf32>
      tpu.vector_store %arg8[%c0_29, %c0_30], %36 {strides = array<i32>} : memref<1x16xf32, #tpu.memory_space<vmem>>, vector<1x16xf32>,
      %cst_31 = arith.constant 0.000000e+00 : f32
      %38 = vector.broadcast %cst_31 : f32 to vector<8x16xf32>
      %c0_32 = arith.constant 0 : index
      %c0_33 = arith.constant 0 : index
      %39 = vector.load %arg9[%c0_32, %c0_33] : memref<8x16xf32, #tpu.memory_space<vmem>>, vector<8x16xf32>
      tpu.vector_store %arg9[%c0_32, %c0_33], %38 {strides = array<i32>} : memref<8x16xf32, #tpu.memory_space<vmem>>, vector<8x16xf32>,
      %c0_34 = arith.constant 0 : index
      %c0_35 = arith.constant 0 : index
      %c0_36 = arith.constant 0 : index
      %40 = vector.load %arg3[%c0_34, %c0_35, %c0_36] : memref<1x8x16xf32, #tpu.memory_space<vmem>>, vector<1x8x16xf32>
      %41 = vector.shape_cast %40 : vector<1x8x16xf32> to vector<8x16xf32>
      %cst_37 = arith.constant 0.353553385 : f32
      %42 = vector.broadcast %cst_37 : f32 to vector<8x16xf32>
      %43 = arith.mulf %41, %42 : vector<8x16xf32>
      %c0_38 = arith.constant 0 : index
      %c0_39 = arith.constant 0 : index
      %44 = vector.load %arg10[%c0_38, %c0_39] : memref<8x16xf32, #tpu.memory_space<vmem>>, vector<8x16xf32>
      tpu.vector_store %arg10[%c0_38, %c0_39], %43 {strides = array<i32>} : memref<8x16xf32, #tpu.memory_space<vmem>>, vector<8x16xf32>,
    } else {
    }
    %c0 = arith.constant 0 : index
    %c0_1 = arith.constant 0 : index
    %3 = vector.load %arg10[%c0, %c0_1] : memref<8x16xf32, #tpu.memory_space<vmem>>, vector<8x16xf32>
    %c0_2 = arith.constant 0 : index
    %c0_3 = arith.constant 0 : index
    %c0_4 = arith.constant 0 : index
    %4 = vector.load %arg4[%c0_2, %c0_3, %c0_4] : memref<1x8x16xf32, #tpu.memory_space<vmem>>, vector<1x8x16xf32>
    %5 = vector.shape_cast %4 : vector<1x8x16xf32> to vector<8x16xf32>
    %c0_5 = arith.constant 0 : index
    %c0_6 = arith.constant 0 : index
    %c0_7 = arith.constant 0 : index
    %6 = vector.load %arg5[%c0_5, %c0_6, %c0_7] : memref<1x8x16xf32, #tpu.memory_space<vmem>>, vector<1x8x16xf32>
    %7 = vector.shape_cast %6 : vector<1x8x16xf32> to vector<8x16xf32>
    %cst = arith.constant dense<0.000000e+00> : vector<16x16xf32>
    %8 = tpu.matmul %5, %3, %cst {dimension_numbers = #tpu.dot_dimension_numbers<[0], [0], [1], [1], [0, 1, 1, 1], [], []>} : vector<8x16xf32>, vector<8x16xf32>, vector<16x16xf32> -> vector<16x16xf32>
    %c0_8 = arith.constant 0 : index
    %c0_9 = arith.constant 0 : index
    %9 = vector.load %arg7[%c0_8, %c0_9] : memref<1x16xf32, #tpu.memory_space<vmem>>, vector<1x16xf32>
    %cst_10 = arith.constant dense<0xFF800000> : vector<16xf32>
    %10 = vector.multi_reduction <maximumf>, %8, %cst_10 [0] : vector<16x16xf32> to vector<16xf32>
    %11 = vector.shape_cast %10 : vector<16xf32> to vector<1x16xf32>
    %12 = arith.maximumf %9, %11 : vector<1x16xf32>
    %13 = arith.subf %9, %12 : vector<1x16xf32>
    %14 = math.exp %13 : vector<1x16xf32>
    %15 = vector.broadcast %12 : vector<1x16xf32> to vector<16x16xf32>
    %16 = arith.subf %8, %15 : vector<16x16xf32>
    %17 = math.exp %16 : vector<16x16xf32>
    %cst_11 = arith.constant dense<0.000000e+00> : vector<16xf32>
    %18 = vector.multi_reduction <add>, %17, %cst_11 [0] : vector<16x16xf32> to vector<16xf32>
    %19 = vector.shape_cast %18 : vector<16xf32> to vector<1x16xf32>
    %cst_12 = arith.constant dense<0.000000e+00> : vector<8x16xf32>
    %20 = tpu.matmul %7, %17, %cst_12 {dimension_numbers = #tpu.dot_dimension_numbers<[1], [0], [0], [1], [0, 0, 1, 1], [], []>} : vector<8x16xf32>, vector<16x16xf32>, vector<8x16xf32> -> vector<8x16xf32>
    %c0_13 = arith.constant 0 : index
    %c0_14 = arith.constant 0 : index
    %21 = vector.load %arg8[%c0_13, %c0_14] : memref<1x16xf32, #tpu.memory_space<vmem>>, vector<1x16xf32>
    %22 = arith.mulf %14, %21 : vector<1x16xf32>
    %23 = arith.addf %22, %19 : vector<1x16xf32>
    %c0_15 = arith.constant 0 : index
    %c0_16 = arith.constant 0 : index
    %24 = vector.load %arg8[%c0_15, %c0_16] : memref<1x16xf32, #tpu.memory_space<vmem>>, vector<1x16xf32>
    tpu.vector_store %arg8[%c0_15, %c0_16], %23 {strides = array<i32>} : memref<1x16xf32, #tpu.memory_space<vmem>>, vector<1x16xf32>,
    %c0_17 = arith.constant 0 : index
    %c0_18 = arith.constant 0 : index
    %25 = vector.load %arg9[%c0_17, %c0_18] : memref<8x16xf32, #tpu.memory_space<vmem>>, vector<8x16xf32>
    %26 = vector.broadcast %14 : vector<1x16xf32> to vector<8x16xf32>
    %27 = arith.mulf %26, %25 : vector<8x16xf32>
    %28 = arith.addf %27, %20 : vector<8x16xf32>
    %c0_19 = arith.constant 0 : index
    %c0_20 = arith.constant 0 : index
    %29 = vector.load %arg9[%c0_19, %c0_20] : memref<8x16xf32, #tpu.memory_space<vmem>>, vector<8x16xf32>
    tpu.vector_store %arg9[%c0_19, %c0_20], %28 {strides = array<i32>} : memref<8x16xf32, #tpu.memory_space<vmem>>, vector<8x16xf32>,
    %c0_21 = arith.constant 0 : index
    %c0_22 = arith.constant 0 : index
    %30 = vector.load %arg7[%c0_21, %c0_22] : memref<1x16xf32, #tpu.memory_space<vmem>>, vector<1x16xf32>
    tpu.vector_store %arg7[%c0_21, %c0_22], %12 {strides = array<i32>} : memref<1x16xf32, #tpu.memory_space<vmem>>, vector<1x16xf32>,
    %c0_i32_23 = arith.constant 0 : i32
    %31 = arith.cmpi eq, %arg2, %c0_i32_23 : i32
    %32 = arith.extui %31 : i1 to i32
    %c0_i32_24 = arith.constant 0 : i32
    %33 = arith.cmpi ne, %32, %c0_i32_24 : i32
    scf.if %33 {
      %c0_25 = arith.constant 0 : index
      %c0_26 = arith.constant 0 : index
      %34 = vector.load %arg8[%c0_25, %c0_26] : memref<1x16xf32, #tpu.memory_space<vmem>>, vector<1x16xf32>
      %35 = tpu.reciprocal %34 {approx = true} : vector<1x16xf32> -> vector<1x16xf32>
      %36 = arith.mulf %34, %35 : vector<1x16xf32>
      %cst_27 = arith.constant 2.000000e+00 : f32
      %37 = vector.broadcast %cst_27 : f32 to vector<1x16xf32>
      %38 = arith.subf %37, %36 : vector<1x16xf32>
      %39 = arith.mulf %35, %38 : vector<1x16xf32>
      %c0_28 = arith.constant 0 : index
      %c0_29 = arith.constant 0 : index
      %40 = vector.load %arg9[%c0_28, %c0_29] : memref<8x16xf32, #tpu.memory_space<vmem>>, vector<8x16xf32>
      %41 = vector.broadcast %39 : vector<1x16xf32> to vector<8x16xf32>
      %42 = arith.mulf %40, %41 : vector<8x16xf32>
      %c0_30 = arith.constant 0 : index
      %c0_31 = arith.constant 0 : index
      %c0_32 = arith.constant 0 : index
      %43 = vector.load %arg6[%c0_30, %c0_31, %c0_32] : memref<1x8x16xf32, #tpu.memory_space<vmem>>, vector<1x8x16xf32>
      %44 = vector.shape_cast %43 : vector<1x8x16xf32> to vector<8x16xf32>
      %45 = vector.shape_cast %42 : vector<8x16xf32> to vector<1x8x16xf32>
      tpu.vector_store %arg6[%c0_30, %c0_31, %c0_32], %45 {strides = array<i32>} : memref<1x8x16xf32, #tpu.memory_space<vmem>>, vector<1x8x16xf32>,
    } else {
    }
    return
  }
  func.func @transform_0(%arg0: i32, %arg1: i32, %arg2: i32) -> (i32, i32, i32) {
    %c0_i32 = arith.constant 0 : i32
    %c0_i32_0 = arith.constant 0 : i32
    return %arg0, %c0_i32, %arg1 : i32, i32, i32
  }
  func.func @transform_1(%arg0: i32, %arg1: i32, %arg2: i32) -> (i32, i32, i32) {
    %c1_i32 = arith.constant 1 : i32
    %c0_i32 = arith.constant 0 : i32
    return %arg0, %c1_i32, %arg2 : i32, i32, i32
  }
  func.func @transform_2(%arg0: i32, %arg1: i32, %arg2: i32) -> (i32, i32, i32) {
    %c2_i32 = arith.constant 2 : i32
    %c0_i32 = arith.constant 0 : i32
    return %arg0, %c2_i32, %arg2 : i32, i32, i32
  }
  func.func @transform_3(%arg0: i32, %arg1: i32, %arg2: i32) -> (i32, i32, i32) {
    %c0_i32 = arith.constant 0 : i32
    %c0_i32_0 = arith.constant 0 : i32
    return %arg0, %c0_i32, %arg1 : i32, i32, i32
  }
}

</mosaic_0001>

<bundles_post_ra>
// kernel: tpu_custom_call.1
= control target key start
LH: loop header
LB: loop body
LE: loop exit
PB: predicated region body
PF: predicated region fallthrough
CT: control target
= control target key end

     0   :  { %8 = vsyncpa [#allocation7], 0  ;;  %s1002_s0 = inlined_call_operand.vmem [shape: f32[4,24,16], index: 0, kind: input, shape index: {}]   ;;  %s1003_s1 = inlined_call_operand.vmem [shape: f32[4,24,16], index: 1, kind: input, shape index: {}]   ;;  %s1004_s2 = inlined_call_operand.vmem [shape: f32[4,24,16], index: 2, kind: input, shape index: {}]   ;;  %s1005_s3 = inlined_call_operand.hbm [shape: f32[4,8,16], index: 3, kind: output, shape index: {}]  }
   0x1   :  { %10 = vsyncpa [#allocation7 + $0x1], 0  ;;  %s879_s12 = smov 0   ;;  %s881_s13 = smov 0  }
   0x2   :  { %s883_s14 = smov 0   ;;  %s885_s15 = smov 0  }
   0x3   :  { %s887_s16 = smov 0   ;;  %s889_s17 = smov 0  }
   0x4 LB: > { %s674_s18 = sadd.s32 4294967295, %s853_s17   ;;  %s675_s19 = sadd.s32 4294967294, %s853_s17   ;;  %s853_s17 = sphi %s889_s17, %s16_s17   ;;  %s849_s16 = sphi %s887_s16, %s1012_s16   ;;  %s845_s15 = sphi %s885_s15, %s1011_s15   ;;  %s841_s14 = sphi %s883_s14, %s1010_s14   ;;  %s837_s13 = sphi %s881_s13, %s1009_s13   ;;  %s833_s12 = sphi %s879_s12, %s1008_s12  }
   0x5   : > { %s35_s20 = sadd.s32 1, %s849_s16  ;;  %s128_s21 = sadd.s32 1, %s841_s14 }
   0x6   : > { %p37_p0 = scmp.ge.s32.totalorder %s35_s20, 4  ;;  %p138_p1 = scmp.ne.s32.totalorder %s841_s14, %s837_s13 }
   0x7   : > { %p139_p2 = scmp.eq.s32.totalorder %s674_s18, 3  ;;  %p144_p3 = scmp.ne.s32.totalorder %s837_s13, %s833_s12 }
   0x8   : > { %s1014_s20 = smov (%p37_p0, %s35_s20), 0  ;;  %p145_p5 = scmp.eq.s32.totalorder %s675_s19, 3 }
   0x9   : > { %p919_p4 = por %p139_p2, %p138_p1  ;;  %s123_s23 = ssub.s32 %s849_s16, %s1014_s20 }
   0xa   : > { %p678_p6 = scmp.ge.s32.totalorder %s853_s17, 1  ;;  %p126_p7 = scmp.eq.s32.totalorder %s123_s23, 0 }
   0xb   : > { %p926_p8 = por %p145_p5, %p144_p3  ;;  %p198_p9 = scmp.lt.s32.totalorder %s853_s17, 5 }
   0xc   : > { %s932_s25 = scalar_select %p126_p7, %s841_s14, %s128_s21  }
   0xd   : > { %p199_p10 = pnand %p678_p6, %p198_p9 }
   0xe   : > { %p243_p11 = scmp.lt.s32.totalorder (!%p199_p10), %s845_s15, 3  ;;  %s240_s10 = sand.u32 (!%p199_p10), 1, %s837_s13  }
   0xf   : > { %202 = sbr.rel (%p199_p10) target bundleno = 609 (0x261), region = 32  ;;  %s679_s11 = sshll.u32 (!%p199_p10), %s240_s10, 3 }
  0x10   : > { %s689_s18 = sshll.u32 (!%p199_p10), %s845_s15, 7  ;;  %s242_s19 = scalar_lea.vmem (!%p199_p10), [#allocation6], %s679_s11 }
  0x11   : > { %s555_s21 = sshll.u32 (!%p199_p10), %s242_s19, 4  ;;  %s541_s28 = scalar_lea.sflag (!%p199_p10), [#allocation7], %s240_s10  ;;  %s556_s21 = int_to_ptr.vmem [resolvable:$true] %s555_s21 }
  0x12   : > { %s777_s29 = scalar_lea.vmem (!%p199_p10), %s556_s21, 128 }
  0x13   : > { %p778_p12 = scmp.ne.s32.totalorder (!%p199_p10), %s556_s21, %s777_s29 }
  0x14   : > { %s244_s26 = scalar_select %p243_p11, %s845_s15, 3  ;;  %vm276_vm0 = vcmask 130048   ;;  %vm316_vm1 = vcmask 64512   ;;  %vm273_vm2 = vcmask 122880   ;;  %v855_v6 = vmov -inf  }
  0x15   : > { %274 = vst.msk [vmem:[#allocation2] sm:$0x1] %vm273_vm2, %v855_v6  ;;  %v856_v7 = vmov 0.0   ;;  %vm857_vm3 = vmmov 0   ;;  %v414_v15 = vlaneseq  ;;  %p779_p13 = pnand %p778_p12, %p919_p4 }
  0x16   : > { %s936_s27 = smul.u32 24, %s244_s26  ;;  %275 = vst.msk [vmem:[#allocation3] sm:$0x1] %vm273_vm2, %v856_v7  ;;  %703 = vmatprep.subr.mxu1 %v856_v7  ;;  %707 = vmatprep.mubr.msk.f32.mxu1 %vm857_vm3, %v856_v7 }
  0x17   : > { %277 = vst.msk [vmem:[#allocation4] sm:$0xff] %vm276_vm0, %v856_v7  ;;  %v415_v18 = vshrl.u32 %v414_v15, 7  ;;  %p780_p0 = pneg %p779_p13 }
  0x18   : > { %s614_s30 = scalar_lea.vmem %s1003_s1, %s936_s27  ;;  %s250_s6 = scalar_lea.vmem %s1002_s0, %s936_s27 }
  0x19   : > { %v683_v0 = vld [vmem:[%s614_s30 + $0x8] sm:$0xff]  ;;  %v278_v1 = vld [vmem:[%s250_s6] sm:$0xff]  ;;  %v416_v22 = vsub.s32 0, %v415_v18  ;;  %s619_s9 = scalar_lea.vmem %s1004_s2, %s936_s27  ;;  %s553_s27 = scalar_lea.hbm %s1005_s3, %s689_s18 }
  0x1a   : > { %284 = vxpose.xlu0.b32.start.end [1/1] (short) (narrow) %v683_v0, 16  ;;  %v279_v2 = vmul.f32 0.35355338, %v278_v1  ;;  %v684_v35 = vld [vmem:[%s619_s9 + $0x10] sm:$0xff]  ;;  %s858_s30 = smov [#allocation6]  }
  0x1b   : > { %s781_s15 = sshll.u32 %s858_s30, 4  ;;  %s782_s15 = int_to_ptr.vmem [resolvable:$false] %s781_s15 }
  0x1c   : > { %280 = vst.msk [vmem:[#allocation5] sm:$0xff] %vm276_vm0, %v279_v2  ;;  %v398_v20 = vld [vmem:[#allocation2] sm:$0x1]  ;;  %s783_s4 = scalar_lea.vmem %s782_s15, 256  ;;  %p784_p1 = scmp.lt.s32.totalorder %s556_s21, %s782_s15 }
  0x1d   : > { %v507_v42 = vld [vmem:[#allocation3] sm:$0x1]  ;;  %p785_p2 = scmp.lt.s32.totalorder %s783_s4, %s777_s29 }
  0x1e   : > { %v512_v50 = vld [vmem:[#allocation4] sm:$0xff] }
  0x1f   : > { %p786_p3 = por %p785_p2, %p784_p1 }
  0x21   : > { %p787_p5 = pnand %p786_p3, %p780_p0 }
  0x23   : > { %v281_v3 = vld [vmem:[#allocation5] sm:$0xff] }
  0x24   : > { %698 = vmatprep.subr.mxu0 %v281_v3 }
  0x25   : > { %699 = vmatpush3.msra.mxu0 %v281_v3 }
  0x96   : > { %v300_v4 = vpop.trf.xlu0 }
  0x97   : > { %700 = vmatprep.mubr.msk.f32.mxu0 %vm316_vm1, %v300_v4 }
  0x9a   : > { %v301_v5 = vpop.trf.xlu0 }
  0x9b   : > { %701 = vmatmul.mubr.msk.f32.vlgmr.msra.gmra.mxu0 %vm316_vm1, %v301_v5 }
 0x15b   : > { %v702_v8 = vpop.f32.mrf.mxu0 }
 0x15c   : > { %v401_v10 = vsel %vm276_vm0, %v702_v8, -inf }
 0x15d   : > { %v389_v9 = vpop.f32.mrf.mxu0 }
 0x15e   : > { %v400_v11 = vsel %vm276_vm0, %v389_v9, -inf }
 0x15f   : > { %v402_v12 = vmax.f32 %v400_v11, %v401_v10 }
 0x161   : > { %v403_v13 = vrot.slane %v402_v12, 4 }
 0x163   : > { %v404_v14 = vmax.f32 %v402_v12, %v403_v13 }
 0x165   : > { %v405_v16 = vrot.slane %v404_v14, 2 }
 0x167   : > { %v406_v17 = vmax.f32 %v404_v14, %v405_v16 }
 0x169   : > { %v407_v19 = vrot.slane %v406_v17, 1 }
 0x16b   : > { %v408_v21 = vmax.f32 %v406_v17, %v407_v19 }
 0x16d   : > { %v409_v23 = vmax.f32 %v398_v20, %v408_v21 }
 0x16f   : > { %v417_v24 = vrot.slane %v409_v23, %v416_v22  ;;  %522 = vst.msk [vmem:[#allocation2] sm:$0x1] %vm273_vm2, %v409_v23  ;;  %v410_v29 = vsub.f32 %v398_v20, %v409_v23 }
 0x171   : > { %v419_v25 = vsub.f32 %v389_v9, %v417_v24  ;;  %v420_v26 = vsub.f32 %v702_v8, %v417_v24  ;;  %v411_v30 = vmul.f32 1.442695, %v410_v29 }
 0x173   : > { %v421_v27 = vmul.f32 1.442695, %v419_v25  ;;  %v423_v28 = vmul.f32 1.442695, %v420_v26 }
 0x175   : > { %769 = vpow2.f32 %v421_v27 }
 0x176   : > { %771 = vpow2.f32 %v423_v28 }
 0x177   : > { %773 = vpow2.f32 %v411_v30 }
 0x182   : > { %v770_v31 = vpop.eup %769 }
 0x183   : > { %v772_v32 = vpop.eup %771  ;;  %v425_v33 = vsel %vm276_vm0, %v770_v31, 0.0 }
 0x184   : > { %v426_v34 = vsel %vm276_vm0, %v772_v32, 0.0  ;;  %704 = vmatpush3.msra.mxu1 %v772_v32  ;;  %v774_v41 = vpop.eup %773 }
 0x185   : > { %v427_v36 = vadd.f32 %v426_v34, %v425_v33  ;;  %705 = vmatprep.subr.mxu1 %v856_v7  ;;  %v508_v45 = vmul.f32 %v774_v41, %v507_v42  ;;  %v517_v49 = vrot.slane %v774_v41, %v416_v22 }
 0x186   : > { %706 = vmatpush3.msra.mxu1 %v770_v31 }
 0x187   : > { %v428_v37 = vrot.slane %v427_v36, 4  ;;  %708 = vmatmul.mubr.msk.f32.vlgmr.msra.gmra.mxu1 %vm276_vm0, %v684_v35  ;;  %v519_v52 = vmul.f32 %v517_v49, %v512_v50 }
 0x189   : > { %v429_v38 = vadd.f32 %v428_v37, %v427_v36 }
 0x18b   : > { %v430_v39 = vrot.slane %v429_v38, 2 }
 0x18d   : > { %v431_v40 = vadd.f32 %v430_v39, %v429_v38 }
 0x18f   : > { %v432_v43 = vrot.slane %v431_v40, 1 }
 0x191   : > { %v433_v44 = vadd.f32 %v432_v43, %v431_v40 }
 0x193   : > { %v509_v46 = vadd.f32 %v508_v45, %v433_v44 }
 0x195   : > { %511 = vst.msk [vmem:[#allocation3] sm:$0x1] %vm273_vm2, %v509_v46 }
 0x19c   : > { %v526_v47 = vld [vmem:[#allocation3] sm:$0x1] }
 0x19d   : > { %775 = vrcp.f32 %v526_v47 }
 0x1aa   : > { %v776_v48 = vpop.eup %775 }
 0x1ab   : > { %v528_v51 = vmul.f32 %v776_v48, %v526_v47 }
 0x1ad   : > { %v529_v55 = vsub.f32 2.0, %v528_v51 }
 0x1af   : > { %v530_v57 = vmul.f32 %v776_v48, %v529_v55 }
 0x1b1   : > { %v536_v58 = vrot.slane %v530_v57, %v416_v22 }
 0x247   : > { %v503_v53 = vpop.f32.mrf.mxu1 }
 0x248   : > { %v520_v54 = vadd.f32 %v519_v52, %v503_v53 }
 0x249   : > { %v709_v56 = vpop.f32.mrf.mxu1 }
 0x24a   : > { %521 = vst.msk [vmem:[#allocation4] sm:$0xff] %vm276_vm0, %v520_v54 }
 0x251   : > { %v531_v59 = vld [vmem:[#allocation4] sm:$0xff] }
 0x252   : > { %v538_v60 = vmul.f32 %v536_v58, %v531_v59 }
 0x254   : > { %539 = vst.msk [vmem:[%s242_s19] sm:$0xff] %vm276_vm0, %v538_v60 }
 0x255   : > { %790 = shalt.err (!%p787_p5)
}
 0x256   : > { %s791_s5 = scalar_lea.hbm %s553_s27, 128  ;;  %s795_s8 = scalar_lea.hbm %s1005_s3, 512 }
 0x257   : > { %p792_p6 = scmp.ne.s32.totalorder %s553_s27, %s791_s5  ;;  %p796_p10 = scmp.lt.s32.totalorder %s553_s27, %s1005_s3 }
 0x258   : > { %p797_p11 = scmp.lt.s32.totalorder %s795_s8, %s791_s5 }
 0x259   : > { %p793_p7 = pnand %p792_p6, %p919_p4 }
 0x25a   : > { %p798_p12 = por %p797_p11, %p796_p10 }
 0x25b   : > { %p794_p9 = pneg %p793_p7 }
 0x25d   : > { %p799_p13 = pnand %p798_p12, %p794_p9 }
 0x25f   : > { %802 = shalt.err (!%p799_p13)
}
 0x260   : > { %711 = dma.vmem_to_hbm [thread:$0]  (%p919_p4), %s556_s21, 128, %s553_s27, %s541_s28  }
 0x261 PF: > { %p717_p0 = scmp.ge.s32.totalorder %s853_s17, 2  ;;  %s567_s11 = sand.u32 1, %s833_s12  }
 0x262   : > { %s568_s18 = scalar_lea.sflag [#allocation7], %s567_s11 }
 0x263   : > { %p714_p1 = pnand %p717_p0, %p926_p8 }
 0x265   : > { %p715_p2 = pneg %p714_p1 }
 0x267   : > { %828 = dma.done.wait (%p715_p2), %s568_s18, 128  }
 0x268   : > { %830 = vsyncadd (%p715_p2), %s568_s18, 4294967168  ;;  %s16_s17 = sadd.s32 1, %s853_s17   ;;  %s1008_s12 = smov %s837_s13 }
 0x269   : > { %p13_p3 = scmp.ge.s32.totalorder %s16_s17, 6   ;;  %s1009_s13 = smov %s841_s14 }
 0x26a   : > { %s1010_s14 = smov %s932_s25  ;;  %s1011_s15 = smov %s849_s16 }
 0x26b   : > { %s1012_s16 = smov %s1014_s20  ;;  %15 = sbr.rel (!%p13_p3) target bundleno = 4 (0x4), region = 81 }
 0x270   :  { %573 = vsyncpa [#allocation7], 1 }
 0x271   :  { %575 = vsyncpa [#allocation7 + $0x1], 1 }

</bundles_post_ra>
